<compile_context>
chip_gen: v5e
topology: v5e:2x2
jax: 0.10.0
libtpu: 0.0.40
codegen_flags: <defaults>
</compile_context>

<pallas_src>
import numpy as np
import jax
import jax.numpy as jnp
from jax.experimental import pallas as pl
from jax.experimental.pallas import tpu as pltpu


def _round_up(x, m):
    return (x + m - 1) // m * m


def _point_embed_kernel(x_ref, basis_ref, phase_ref, w_sc_ref, w_xyz_ref,
                        b_ref, o_ref):
    # x_ref:     (T, 3)        point tile
    # basis_ref: (3, H)        [basis | basis] (duplicated for sin/cos halves)
    # phase_ref: (1, H)        [0 ... 0 | pi/2 ... pi/2]
    # w_sc_ref:  (H, D) bf16   rows of W.T that feed the sin/cos features
    # w_xyz_ref: (3, D) f32    rows of W.T that feed the raw xyz features
    # b_ref:     (1, D)
    # o_ref:     (T, D)
    x = x_ref[...].astype(jnp.float32)                       # (T, 3)
    x0 = x[:, 0:1]
    x1 = x[:, 1:2]
    x2 = x[:, 2:3]

    basis = basis_ref[...]                                   # (3, H)
    # K=3 contraction on the VPU (broadcast multiply-add).  The +pi/2 phase on
    # the second half turns the single sin into [sin(proj) | cos(proj)].
    proj = (x0 * basis[0:1, :] + x1 * basis[1:2, :] + x2 * basis[2:3, :]
            + phase_ref[...])                                # (T, H)
    sc = jnp.sin(proj).astype(jnp.bfloat16)                  # (T, H)

    # Single fused MXU matmul over the sin/cos features, f32 accumulation.
    out = jnp.dot(sc, w_sc_ref[...], preferred_element_type=jnp.float32)

    # xyz columns of the linear layer (K=3) + bias: VPU broadcast MACs in f32.
    w_xyz = w_xyz_ref[...]
    out += (x0 * w_xyz[0:1, :] + x1 * w_xyz[1:2, :] + x2 * w_xyz[2:3, :]
            + b_ref[...])

    o_ref[...] = out.astype(o_ref.dtype)


def point_embed(x, basis, weight, bias, *, tile_n=1024):
    """x: (B, N, 3); basis: (3, H/2); weight: (D, H+3) [PyTorch nn.Linear];
    bias: (D,). Returns (B, N, D)."""
    B, N, C = x.shape
    assert C == 3
    half = basis.shape[1]              # hidden_dim // 2
    hidden = 2 * half
    D = weight.shape[0]

    # ---- one-time operand packing (constant-folded under jit) ----
    basis_full = jnp.concatenate([basis, basis], axis=1).astype(jnp.float32)
    phase = jnp.concatenate(
        [jnp.zeros((1, half), jnp.float32),
         jnp.full((1, half), np.pi / 2, jnp.float32)], axis=1)   # (1, H)
    w_t = weight.T.astype(jnp.float32)                 # (H+3, D)
    w_sc = w_t[:hidden].astype(jnp.bfloat16)           # (H, D)  MXU operand
    w_xyz = w_t[hidden:]                               # (3, D)  VPU operand
    b2d = bias.reshape(1, D).astype(jnp.float32)

    # ---- flatten batch into rows, pad rows to a tile multiple ----
    M = B * N
    xf = x.reshape(M, 3)
    # Big tiles for real workloads; small inputs get a single (>=8-row) tile.
    tile = min(tile_n, _round_up(M, 8))
    Mp = _round_up(M, tile)
    if Mp != M:
        xf = jnp.pad(xf, ((0, Mp - M), (0, 0)))

    out = pl.pallas_call(
        _point_embed_kernel,
        out_shape=jax.ShapeDtypeStruct((Mp, D), x.dtype),
        grid_spec=pltpu.PrefetchScalarGridSpec(
            num_scalar_prefetch=0,
            grid=(Mp // tile,),
            in_specs=[
                pl.BlockSpec((tile, 3), lambda i: (i, 0)),
                pl.BlockSpec((3, hidden), lambda i: (0, 0)),
                pl.BlockSpec((1, hidden), lambda i: (0, 0)),
                pl.BlockSpec((hidden, D), lambda i: (0, 0)),
                pl.BlockSpec((3, D), lambda i: (0, 0)),
                pl.BlockSpec((1, D), lambda i: (0, 0)),
            ],
            out_specs=pl.BlockSpec((tile, D), lambda i: (i, 0)),
        ),
        compiler_params=pltpu.CompilerParams(
            dimension_semantics=("parallel",)),
    )(xf, basis_full, phase, w_sc, w_xyz, b2d)
    return out[:M].reshape(B, N, D)


def make_basis(hidden_dim):
    """Replicates PointEmbed.__init__ buffer `basis` (shape (3, hidden_dim//2))."""
    assert hidden_dim % 6 == 0
    k = hidden_dim // 6
    e = (2.0 ** np.arange(k, dtype=np.float32)) * np.pi
    z = np.zeros(k, dtype=np.float32)
    basis = np.stack([
        np.concatenate([e, z, z]),
        np.concatenate([z, e, z]),
        np.concatenate([z, z, e]),
    ])  # (3, hidden_dim//2)
    return jnp.asarray(basis, dtype=jnp.float32)


def reference(x, basis, weight, bias):
    proj = jnp.einsum('bnd,de->bne', x, basis)
    feats = jnp.concatenate([jnp.sin(proj), jnp.cos(proj), x], axis=2)
    return feats @ weight.T + bias


if __name__ == "__main__":
    hidden_dim, dim = 48, 128
    B, N = 2, 16

    key = jax.random.PRNGKey(0)
    kx, kw, kb = jax.random.split(key, 3)

    x = jax.random.normal(kx, (B, N, 3), dtype=jnp.float32)
    basis = make_basis(hidden_dim)
    # Deterministic synthetic nn.Linear(hidden_dim + 3, dim) params.
    fan_in = hidden_dim + 3
    bound = 1.0 / np.sqrt(fan_in)
    weight = jax.random.uniform(kw, (dim, fan_in), minval=-bound, maxval=bound,
                                dtype=jnp.float32)
    bias = jax.random.uniform(kb, (dim,), minval=-bound, maxval=bound,
                              dtype=jnp.float32)

    out = point_embed(x, basis, weight, bias)
    out = jax.block_until_ready(out)

    ref = reference(x, basis, weight, bias)
    # Tolerance widened vs the pure-f32 version because the fused output
    # matmul uses bf16 operands (f32 accumulation) on the MXU.
    np.testing.assert_allclose(np.asarray(out), np.asarray(ref),
                               rtol=2e-2, atol=2e-2)
    print("KERNEL_OK")
</pallas_src>

<mosaic_0001>
module attributes {stable_mosaic.version = 11 : i64} {
  func.func @_point_embed_kernel(%arg0: i32, %arg1: memref<32x3xf32, #tpu.memory_space<vmem>>, %arg2: memref<3x48xf32, #tpu.memory_space<vmem>>, %arg3: memref<1x48xf32, #tpu.memory_space<vmem>>, %arg4: memref<48x128xbf16, #tpu.memory_space<vmem>>, %arg5: memref<3x128xf32, #tpu.memory_space<vmem>>, %arg6: memref<1x128xf32, #tpu.memory_space<vmem>>, %arg7: memref<32x128xf32, #tpu.memory_space<vmem>>) attributes {dimension_semantics = [#tpu.dimension_semantics<parallel>], iteration_bounds = array<i64: 1>, scalar_prefetch = 0 : i64, scratch_operands = 0 : i64, tpu.core_type = #tpu.core_type<tc>, window_params = [{transform_indices = @transform_0, window_bounds = array<i64: 32, 3>}, {pipeline_mode = #tpu.pipeline_mode<synchronous>, transform_indices = @transform_1, window_bounds = array<i64: 3, 48>}, {pipeline_mode = #tpu.pipeline_mode<synchronous>, transform_indices = @transform_2, window_bounds = array<i64: 1, 48>}, {pipeline_mode = #tpu.pipeline_mode<synchronous>, transform_indices = @transform_3, window_bounds = array<i64: 48, 128>}, {pipeline_mode = #tpu.pipeline_mode<synchronous>, transform_indices = @transform_4, window_bounds = array<i64: 3, 128>}, {pipeline_mode = #tpu.pipeline_mode<synchronous>, transform_indices = @transform_5, window_bounds = array<i64: 1, 128>}, {transform_indices = @transform_6, window_bounds = array<i64: 32, 128>}]} {
    %c0 = arith.constant 0 : index
    %c0_0 = arith.constant 0 : index
    %0 = vector.load %arg1[%c0, %c0_0] : memref<32x3xf32, #tpu.memory_space<vmem>>, vector<32x3xf32>
    %1 = vector.extract_strided_slice %0 {offsets = [0, 0], sizes = [32, 1], strides = [1, 1]} : vector<32x3xf32> to vector<32x1xf32>
    %2 = vector.extract_strided_slice %0 {offsets = [0, 1], sizes = [32, 1], strides = [1, 1]} : vector<32x3xf32> to vector<32x1xf32>
    %3 = vector.extract_strided_slice %0 {offsets = [0, 2], sizes = [32, 1], strides = [1, 1]} : vector<32x3xf32> to vector<32x1xf32>
    %c0_1 = arith.constant 0 : index
    %c0_2 = arith.constant 0 : index
    %4 = vector.load %arg2[%c0_1, %c0_2] : memref<3x48xf32, #tpu.memory_space<vmem>>, vector<3x48xf32>
    %5 = vector.extract_strided_slice %4 {offsets = [0, 0], sizes = [1, 48], strides = [1, 1]} : vector<3x48xf32> to vector<1x48xf32>
    %6 = vector.broadcast %1 : vector<32x1xf32> to vector<32x48xf32>
    %7 = vector.broadcast %5 : vector<1x48xf32> to vector<32x48xf32>
    %8 = arith.mulf %6, %7 : vector<32x48xf32>
    %9 = vector.extract_strided_slice %4 {offsets = [1, 0], sizes = [1, 48], strides = [1, 1]} : vector<3x48xf32> to vector<1x48xf32>
    %10 = vector.broadcast %2 : vector<32x1xf32> to vector<32x48xf32>
    %11 = vector.broadcast %9 : vector<1x48xf32> to vector<32x48xf32>
    %12 = arith.mulf %10, %11 : vector<32x48xf32>
    %13 = arith.addf %8, %12 : vector<32x48xf32>
    %14 = vector.extract_strided_slice %4 {offsets = [2, 0], sizes = [1, 48], strides = [1, 1]} : vector<3x48xf32> to vector<1x48xf32>
    %15 = vector.broadcast %3 : vector<32x1xf32> to vector<32x48xf32>
    %16 = vector.broadcast %14 : vector<1x48xf32> to vector<32x48xf32>
    %17 = arith.mulf %15, %16 : vector<32x48xf32>
    %18 = arith.addf %13, %17 : vector<32x48xf32>
    %c0_3 = arith.constant 0 : index
    %c0_4 = arith.constant 0 : index
    %19 = vector.load %arg3[%c0_3, %c0_4] : memref<1x48xf32, #tpu.memory_space<vmem>>, vector<1x48xf32>
    %20 = vector.broadcast %19 : vector<1x48xf32> to vector<32x48xf32>
    %21 = arith.addf %18, %20 : vector<32x48xf32>
    %22 = math.sin %21 : vector<32x48xf32>
    %23 = arith.truncf %22 : vector<32x48xf32> to vector<32x48xbf16>
    %c0_5 = arith.constant 0 : index
    %c0_6 = arith.constant 0 : index
    %24 = vector.load %arg4[%c0_5, %c0_6] : memref<48x128xbf16, #tpu.memory_space<vmem>>, vector<48x128xbf16>
    %cst = arith.constant dense<0.000000e+00> : vector<32x128xf32>
    %25 = tpu.matmul %23, %24, %cst {dimension_numbers = #tpu.dot_dimension_numbers<[1], [0], [0], [1], [0, 0, 1, 1], [], []>} : vector<32x48xbf16>, vector<48x128xbf16>, vector<32x128xf32> -> vector<32x128xf32>
    %c0_7 = arith.constant 0 : index
    %c0_8 = arith.constant 0 : index
    %26 = vector.load %arg5[%c0_7, %c0_8] : memref<3x128xf32, #tpu.memory_space<vmem>>, vector<3x128xf32>
    %27 = vector.extract_strided_slice %26 {offsets = [0, 0], sizes = [1, 128], strides = [1, 1]} : vector<3x128xf32> to vector<1x128xf32>
    %28 = vector.broadcast %1 : vector<32x1xf32> to vector<32x128xf32>
    %29 = vector.broadcast %27 : vector<1x128xf32> to vector<32x128xf32>
    %30 = arith.mulf %28, %29 : vector<32x128xf32>
    %31 = vector.extract_strided_slice %26 {offsets = [1, 0], sizes = [1, 128], strides = [1, 1]} : vector<3x128xf32> to vector<1x128xf32>
    %32 = vector.broadcast %2 : vector<32x1xf32> to vector<32x128xf32>
    %33 = vector.broadcast %31 : vector<1x128xf32> to vector<32x128xf32>
    %34 = arith.mulf %32, %33 : vector<32x128xf32>
    %35 = arith.addf %30, %34 : vector<32x128xf32>
    %36 = vector.extract_strided_slice %26 {offsets = [2, 0], sizes = [1, 128], strides = [1, 1]} : vector<3x128xf32> to vector<1x128xf32>
    %37 = vector.broadcast %3 : vector<32x1xf32> to vector<32x128xf32>
    %38 = vector.broadcast %36 : vector<1x128xf32> to vector<32x128xf32>
    %39 = arith.mulf %37, %38 : vector<32x128xf32>
    %40 = arith.addf %35, %39 : vector<32x128xf32>
    %c0_9 = arith.constant 0 : index
    %c0_10 = arith.constant 0 : index
    %41 = vector.load %arg6[%c0_9, %c0_10] : memref<1x128xf32, #tpu.memory_space<vmem>>, vector<1x128xf32>
    %42 = vector.broadcast %41 : vector<1x128xf32> to vector<32x128xf32>
    %43 = arith.addf %40, %42 : vector<32x128xf32>
    %44 = arith.addf %25, %43 : vector<32x128xf32>
    %c0_11 = arith.constant 0 : index
    %c0_12 = arith.constant 0 : index
    %45 = vector.load %arg7[%c0_11, %c0_12] : memref<32x128xf32, #tpu.memory_space<vmem>>, vector<32x128xf32>
    tpu.vector_store %arg7[%c0_11, %c0_12], %44 {strides = array<i32>} : memref<32x128xf32, #tpu.memory_space<vmem>>, vector<32x128xf32>,
    return
  }
  func.func @transform_0(%arg0: i32) -> (i32, i32) {
    %c0_i32 = arith.constant 0 : i32
    %c0_i32_0 = arith.constant 0 : i32
    return %arg0, %c0_i32 : i32, i32
  }
  func.func @transform_1(%arg0: i32) -> (i32, i32) {
    %c0_i32 = arith.constant 0 : i32
    %c0_i32_0 = arith.constant 0 : i32
    %c0_i32_1 = arith.constant 0 : i32
    return %c0_i32, %c0_i32_0 : i32, i32
  }
  func.func @transform_2(%arg0: i32) -> (i32, i32) {
    %c0_i32 = arith.constant 0 : i32
    %c0_i32_0 = arith.constant 0 : i32
    %c0_i32_1 = arith.constant 0 : i32
    return %c0_i32, %c0_i32_0 : i32, i32
  }
  func.func @transform_3(%arg0: i32) -> (i32, i32) {
    %c0_i32 = arith.constant 0 : i32
    %c0_i32_0 = arith.constant 0 : i32
    %c0_i32_1 = arith.constant 0 : i32
    return %c0_i32, %c0_i32_0 : i32, i32
  }
  func.func @transform_4(%arg0: i32) -> (i32, i32) {
    %c0_i32 = arith.constant 0 : i32
    %c0_i32_0 = arith.constant 0 : i32
    %c0_i32_1 = arith.constant 0 : i32
    return %c0_i32, %c0_i32_0 : i32, i32
  }
  func.func @transform_5(%arg0: i32) -> (i32, i32) {
    %c0_i32 = arith.constant 0 : i32
    %c0_i32_0 = arith.constant 0 : i32
    %c0_i32_1 = arith.constant 0 : i32
    return %c0_i32, %c0_i32_0 : i32, i32
  }
  func.func @transform_6(%arg0: i32) -> (i32, i32) {
    %c0_i32 = arith.constant 0 : i32
    %c0_i32_0 = arith.constant 0 : i32
    return %arg0, %c0_i32 : i32, i32
  }
}

</mosaic_0001>

<bundles_post_ra>
// kernel: tpu_custom_call.1
= control target key start
LH: loop header
LB: loop body
LE: loop exit
PB: predicated region body
PF: predicated region fallthrough
CT: control target
= control target key end

     0   :  { %v919_v2 = vmov 0   ;;  %v920_v3 = vmov 1   ;;  %s1525_s0 = inlined_call_operand.vmem [shape: f32[32,3], index: 0, kind: input, shape index: {}]   ;;  %s1526_s1 = inlined_call_operand.vmem [shape: f32[3,48], index: 1, kind: input, shape index: {}]   ;;  %s1527_s2 = inlined_call_operand.vmem [shape: f32[1,48], index: 2, kind: input, shape index: {}]   ;;  %s1528_s3 = inlined_call_operand.vmem [shape: bf16[48,128], index: 3, kind: input, shape index: {}]   ;;  %s1529_s4 = inlined_call_operand.vmem [shape: f32[3,128], index: 4, kind: input, shape index: {}]   ;;  %s1530_s5 = inlined_call_operand.vmem [shape: f32[1,128], index: 5, kind: input, shape index: {}]   ;;  %s1531_s6 = inlined_call_operand.hbm [shape: f32[32,128], index: 6, kind: output, shape index: {}]  }
   0x1   :  { %v27_v0 = vld [vmem:[%s1525_s0 + $0x10] sm:$0xff]  ;;  %v25_v1 = vld [vmem:[%s1525_s0] sm:$0xff]  ;;  %884 = vset.pattern.permute.xlu1 %v919_v2  ;;  %883 = vset.pattern.permute.xlu0 %v919_v2 }
   0x2   :  { %42 = vperm.xlu1 %884, %v27_v0   ;;  %32 = vperm.xlu0 %883, %v25_v1  }
   0x3   :  { %885 = vset.pattern.permute.xlu2 %v920_v3 }
   0x4   :  { %11 = vsyncpa [#allocation3], 0  ;;  %56 = vperm.xlu2 %885, %v25_v1   ;;  %v28_v4 = vld [vmem:[%s1525_s0 + $0x18] sm:$0xff]  ;;  %v26_v5 = vld [vmem:[%s1525_s0 + $0x8] sm:$0xff]  ;;  %v921_v6 = vmov 2   ;;  %s827_s17 = sshll.u32 %s1531_s6, 4  ;;  %s828_s17 = int_to_ptr.hbm [resolvable:$true] %s827_s17 }
   0x5   :  { %v29_v9 = vld [vmem:[%s1526_s1] sm:$0x7]  ;;  %s929_s18 = smov 128   ;;  %s930_s19 = smov 8  }
   0x6   :  { %v741_v10 = vld [vmem:[%s1529_s4] sm:$0x7]  ;;  %v71_v11 = vperm.slane %v29_v9, 1  ;;  %v986_v14 = vperm.slane %v29_v9, 2  ;;  %v50_v16 = vperm.slane %v29_v9, 0 }
   0x7   :  { %v747_v12 = vperm.slane %v741_v10, 1  ;;  %v988_v15 = vperm.slane %v741_v10, 2  ;;  %v742_v17 = vperm.slane %v741_v10, 0  ;;  %v995_v30 = vld [vmem:[%s1527_s2] ss:$0 sm:$0xff] }
   0x8   :  { %v923_v10 = vmov 1326507024  }
   0xa   :  { %47 = vperm.xlu1 %884, %v28_v4   ;;  %37 = vperm.xlu0 %883, %v26_v5  }
   0xc   :  { %60 = vperm.xlu2 %885, %v26_v5  }
  0x12   :  { %887 = vset.pattern.permute.xlu1 %v920_v3  ;;  %886 = vset.pattern.permute.xlu0 %v920_v3 }
  0x13   :  { %68 = vperm.xlu1 %887, %v28_v4   ;;  %64 = vperm.xlu0 %886, %v27_v0  }
  0x14   :  { %888 = vset.pattern.permute.xlu2 %v921_v6 }
  0x15   :  { %81 = vperm.xlu2 %888, %v25_v1  }
  0x1b   :  { %889 = vset.pattern.permute.xlu1 %v921_v6  ;;  %890 = vset.pattern.permute.xlu0 %v921_v6  ;;  %v922_v6 = vmov 920167782  }
  0x1c   :  { %85 = vperm.xlu1 %889, %v26_v5   ;;  %93 = vperm.xlu0 %890, %v28_v4   ;;  %v867_v5 = vld [vmem:[%s1528_s3 + $0x10] sm:$0xff] }
  0x1d   :  { %89 = vperm.xlu2 %888, %v27_v0   ;;  %803 = vmatpush.bf16.msra.mxu0 %v867_v5 }
  0x1e   :  { %868 = vmatpush.bf16.msra.mxu1 %v867_v5 }
  0x5e   :  { %v57_v7 = vpop.permute.xlu2 %56 }
  0x5f   :  { %v72_v18 = vmul.f32 %v71_v11, %v57_v7  ;;  %v748_v19 = vmul.f32 %v747_v12, %v57_v7 }
  0x66   :  { %v61_v8 = vpop.permute.xlu2 %60 }
  0x67   :  { %v749_v41 = vmul.f32 %v747_v12, %v61_v8  ;;  %v73_v63 = vmul.f32 %v71_v11, %v61_v8 }
  0x6f   :  { %v82_v13 = vpop.permute.xlu2 %81 }
  0x70   :  { %v97_v22 = vmul.f32 %v986_v14, %v82_v13  ;;  %v757_v23 = vmul.f32 %v988_v15, %v82_v13 }
  0x74   :  { %v43_v20 = vpop.permute.xlu1 %42  ;;  %v33_v21 = vpop.permute.xlu0 %32 }
  0x75   :  { %v53_v24 = vmul.f32 %v50_v16, %v43_v20  ;;  %v745_v25 = vmul.f32 %v742_v17, %v43_v20  ;;  %v51_v26 = vmul.f32 %v50_v16, %v33_v21  ;;  %v743_v27 = vmul.f32 %v742_v17, %v33_v21 }
  0x76   :  { %v925_v20 = vmov 2102212464  }
  0x77   :  { %v76_v28 = vadd.f32 %v72_v18, %v51_v26  ;;  %v752_v29 = vadd.f32 %v748_v19, %v743_v27  ;;  %v90_v31 = vpop.permute.xlu2 %89 }
  0x78   :  { %v759_v32 = vmul.f32 %v988_v15, %v90_v31  ;;  %v99_v51 = vmul.f32 %v986_v14, %v90_v31 }
  0x79   :  { %v101_v33 = vadd.f32 %v97_v22, %v76_v28  ;;  %v998_v34 = vadd.f32 %v757_v23, %v752_v29  ;;  %v926_v22 = vmov 683565275  }
  0x7b   :  { %v1001_v35 = vadd.f32 %v995_v30, %v101_v33 }
  0x7c   :  { %v48_v36 = vpop.permute.xlu1 %47  ;;  %v38_v37 = vpop.permute.xlu0 %37 }
  0x7d   :  { %v116_v38 = vand.u32 2139095040, %v1001_v35  ;;  %v54_v39 = vmul.f32 %v50_v16, %v48_v36  ;;  %v746_v40 = vmul.f32 %v742_v17, %v48_v36  ;;  %v744_v42 = vmul.f32 %v742_v17, %v38_v37 }
  0x7e   :  { %v113_v45 = vand.u32 2147483647, %v1001_v35  ;;  %v52_v57 = vmul.f32 %v50_v16, %v38_v37  ;;  %v866_v16 = vld [vmem:[%s1528_s3 + $0x8] sm:$0xff]  ;;  %v924_v17 = vmov 2475754826  }
  0x7f   :  { %v117_v43 = vshrl.u32 %v116_v38, 23  ;;  %v1004_v44 = vadd.f32 %v749_v41, %v744_v42  ;;  %804 = vmatpush.bf16.msra.mxu0 %v866_v16  ;;  %869 = vmatpush.bf16.msra.mxu1 %v866_v16  ;;  %v865_v42 = vld [vmem:[%s1528_s3] sm:$0xff] }
  0x80   :  { %v120_v48 = vand.u32 8388607, %v113_v45 }
  0x81   :  { %v839_v46 = vadd.s32 4294967169, %v117_v43 }
  0x82   :  { %v121_v62 = vor.u32 8388608, %v120_v48 }
  0x83   :  { %v123_v47 = vadd.s32 1, %v839_v46  ;;  %805 = vmatpush.bf16.msra.mxu0 %v865_v42  ;;  %870 = vmatpush.bf16.msra.mxu1 %v865_v42 }
  0x84   :  { %v1032_v19 = vshll.u32 %v121_v62, 8 }
  0x85   :  { %vm124_vm0 = vcmp.gt.s32.totalorder %v123_v47, 0  ;;  %v69_v49 = vpop.permute.xlu1 %68  ;;  %v65_v50 = vpop.permute.xlu0 %64 }
  0x86   :  { %v125_v52 = vsel %vm124_vm0, %v123_v47, 0  ;;  %v75_v53 = vmul.f32 %v71_v11, %v69_v49  ;;  %v751_v54 = vmul.f32 %v747_v12, %v69_v49  ;;  %v74_v55 = vmul.f32 %v71_v11, %v65_v50 }
  0x87   :  { %v127_v56 = vand.u32 31, %v125_v52  ;;  %v750_v58 = vmul.f32 %v747_v12, %v65_v50  ;;  %v1010_v0 = vshrl.u32 %v125_v52, 5  ;;  %v77_v11 = vadd.f32 %v73_v63, %v52_v57 }
  0x88   :  { %v79_v59 = vadd.f32 %v75_v53, %v54_v39  ;;  %v755_v60 = vadd.f32 %v751_v54, %v746_v40  ;;  %v78_v61 = vadd.f32 %v74_v55, %v53_v24  ;;  %v927_v24 = vmov 2131351028  }
  0x89   :  { %v1012_v1 = vsub.s32 32, %v127_v56  ;;  %v754_v3 = vadd.f32 %v750_v58, %v745_v25  ;;  %v142_v9 = vshll.u32 %v922_v6, %v127_v56  ;;  %v139_v21 = vshll.u32 %v925_v20, %v127_v56 }
  0x8a   :  { %v103_v4 = vadd.f32 %v99_v51, %v78_v61  ;;  %vm148_vm1 = vcmp.lt.s32.totalorder %v1010_v0, 4  ;;  %v130_v23 = vshll.u32 %v926_v22, %v127_v56  ;;  %v133_v31 = vshll.u32 %v924_v17, %v127_v56 }
  0x8b   :  { %v140_v7 = vshrl.u32 %v922_v6, %v1012_v1  ;;  %v143_v8 = vshrl.u32 %v923_v10, %v1012_v1  ;;  %v1025_v13 = vadd.f32 %v759_v32, %v754_v3  ;;  %v131_v18 = vshrl.u32 %v924_v17, %v1012_v1 }
  0x8c   :  { %v1023_v12 = vadd.f32 %v995_v30, %v103_v4  ;;  %v134_v25 = vshrl.u32 %v927_v24, %v1012_v1  ;;  %v137_v32 = vshrl.u32 %v925_v20, %v1012_v1  ;;  %v136_v38 = vshll.u32 %v927_v24, %v127_v56 }
  0x8d   :  { %v144_v26 = vor.u32 %v143_v8, %v142_v9  ;;  %v141_v33 = vor.u32 %v140_v7, %v139_v21  ;;  %v1051_v43 = vor.u32 %v131_v18, %v130_v23  ;;  %vm145_vm2 = vcmp.lt.s32.totalorder %v1010_v0, 1 }
  0x8e   :  { %v426_v27 = vand.u32 2139095040, %v1023_v12  ;;  %v86_v28 = vpop.permute.xlu1 %85  ;;  %v94_v29 = vpop.permute.xlu0 %93  ;;  %v1056_v48 = vor.u32 %v134_v25, %v133_v31  ;;  %v1058_v49 = vor.u32 %v137_v32, %v136_v38  ;;  %vm146_vm3 = vcmp.lt.s32.totalorder %v1010_v0, 2 }
  0x8f   :  { %v98_v36 = vmul.f32 %v986_v14, %v86_v28  ;;  %v758_v37 = vmul.f32 %v988_v15, %v86_v28  ;;  %v100_v40 = vmul.f32 %v986_v14, %v94_v29  ;;  %v760_v41 = vmul.f32 %v988_v15, %v94_v29 }
  0x90   :  { %v427_v39 = vshrl.u32 %v426_v27, 23  ;;  %v158_v14 = vsel %vm148_vm1, %v144_v26, 1326507024  ;;  %v154_v52 = vsel %vm148_vm1, %v141_v33, 920167782  ;;  %vm147_vm4 = vcmp.lt.s32.totalorder %v1010_v0, 3 }
  0x91   :  { %v102_v46 = vadd.f32 %v98_v36, %v77_v11  ;;  %v1054_v47 = vadd.f32 %v758_v37, %v1004_v44  ;;  %v104_v50 = vadd.f32 %v100_v40, %v79_v59  ;;  %v1062_v51 = vadd.f32 %v760_v41, %v755_v60 }
  0x92   :  { %v845_v15 = vadd.s32 4294967169, %v427_v39  ;;  %v162_v44 = vand.u32 65535, %v1032_v19  ;;  %v153_v57 = vsel %vm145_vm2, %v1051_v43, %v1056_v48  ;;  %v157_v58 = vsel %vm145_vm2, %v1056_v48, %v1058_v49 }
  0x93   :  { %v1067_v53 = vadd.f32 %v995_v30, %v102_v46  ;;  %v1072_v55 = vadd.f32 %v995_v30, %v104_v50  ;;  %v159_v30 = vsel %vm147_vm4, %v141_v33, %v158_v14  ;;  %v155_v60 = vsel %vm147_vm4, %v1058_v49, %v154_v52 }
  0x94   :  { %v433_v54 = vadd.s32 1, %v845_v15  ;;  %v160_v61 = vsel %vm146_vm3, %v157_v58, %v159_v30  ;;  %v156_v16 = vsel %vm146_vm3, %v153_v57, %v155_v60  ;;  %v163_v18 = vshrl.u32 %v1032_v19, 16 }
  0x95   :  { %v271_v56 = vand.u32 2139095040, %v1067_v53  ;;  %v581_v59 = vand.u32 2139095040, %v1072_v55  ;;  %v164_v3 = vand.u32 65535, %v160_v61  ;;  %v165_v4 = vshrl.u32 %v160_v61, 16 }
  0x96   :  { %vm434_vm5 = vcmp.gt.s32.totalorder %v433_v54, 0  ;;  %v187_v36 = vshrl.u32 %v156_v16, 16  ;;  %v186_v46 = vand.u32 65535, %v156_v16 }
  0x97   :  { %v1093_v62 = vsel %vm434_vm5, %v433_v54, 0  ;;  %v272_v63 = vshrl.u32 %v271_v56, 23  ;;  %v582_v7 = vshrl.u32 %v581_v59, 23  ;;  %v167_v8 = vmul.u32 %v165_v4, %v162_v44 }
  0x98   :  { %v1096_v5 = vand.u32 31, %v1093_v62  ;;  %v166_v25 = vmul.u32 %v164_v3, %v162_v44  ;;  %v1112_v29 = vmul.u32 %v164_v3, %v163_v18  ;;  %v169_v41 = vmul.u32 %v165_v4, %v163_v18 }
  0x99   :  { %v842_v9 = vadd.s32 4294967169, %v272_v63  ;;  %v848_v23 = vadd.s32 4294967169, %v582_v7  ;;  %v170_v26 = vshll.u32 %v167_v8, 16  ;;  %v189_v52 = vmul.u32 %v187_v36, %v162_v44 }
  0x9a   :  { %v1099_v11 = vsub.s32 32, %v1096_v5  ;;  %v1106_v27 = vshll.u32 %v922_v6, %v1096_v5  ;;  %v172_v42 = vshll.u32 %v1112_v29, 16  ;;  %v129_v56 = vshrl.u32 %v926_v22, %v1012_v1 }
  0x9b   :  { %v278_v21 = vadd.s32 1, %v842_v9  ;;  %v588_v31 = vadd.s32 1, %v848_v23  ;;  %vm174_vm7 = vc.u32 %v166_v25, %v170_v26  ;;  %v176_v39 = vadd.s32 %v170_v26, %v166_v25 }
  0x9c   :  { %v1110_v28 = vshrl.u32 %v923_v10, %v1099_v11  ;;  %v175_v38 = vsel %vm174_vm7, 1, %v919_v2  ;;  %v150_v59 = vsel %vm148_vm1, %v1058_v49, 2102212464  ;;  %v188_v60 = vmul.u32 %v186_v46, %v162_v44 }
  0x9d   :  { %vm279_vm6 = vcmp.gt.s32.totalorder %v278_v21, 0  ;;  %vm589_vm8 = vcmp.gt.s32.totalorder %v588_v31, 0  ;;  %v177_v50 = vadd.s32 %v175_v38, %v169_v41  ;;  %vm178_vm9 = vc.u32 %v176_v39, %v172_v42 }
  0x9e   :  { %v454_v32 = vor.u32 %v1110_v28, %v1106_v27  ;;  %v280_v33 = vsel %vm279_vm6, %v278_v21, 0  ;;  %v1117_v40 = vsel %vm589_vm8, %v588_v31, 0  ;;  %v179_v57 = vsel %vm178_vm9, 1, %v919_v2 }
  0x9f   :  { %v282_v37 = vand.u32 31, %v280_v33  ;;  %v1123_v15 = vand.u32 31, %v1117_v40  ;;  %v1138_v61 = vshrl.u32 %v280_v33, 5  ;;  %v190_v1 = vmul.u32 %v186_v46, %v163_v18 }
  0xa0   :  { %v181_v9 = vadd.s32 %v179_v57, %v177_v50  ;;  %v192_v16 = vshll.u32 %v189_v52, 16  ;;  %v149_v49 = vsel %vm145_vm2, %v129_v56, %v1051_v43  ;;  %v151_v44 = vsel %vm147_vm4, %v1056_v48, %v150_v59 }
  0xa1   :  { %v1120_v14 = vsub.s32 32, %v282_v37  ;;  %v1133_v30 = vsub.s32 32, %v1123_v15  ;;  %v294_v63 = vshll.u32 %v925_v20, %v282_v37  ;;  %v297_v3 = vshll.u32 %v922_v6, %v282_v37 }
  0xa2   :  { %v1144_v4 = vshll.u32 %v922_v6, %v1123_v15  ;;  %v171_v23 = vshrl.u32 %v167_v8, 16  ;;  %v191_v31 = vmul.u32 %v187_v36, %v163_v18  ;;  %vm196_vm10 = vc.u32 %v188_v60, %v192_v16 }
  0xa3   :  { %v295_v54 = vshrl.u32 %v922_v6, %v1120_v14  ;;  %v298_v58 = vshrl.u32 %v923_v10, %v1120_v14  ;;  %v1148_v7 = vshrl.u32 %v923_v10, %v1133_v30  ;;  %v194_v10 = vshll.u32 %v190_v1, 16 }
  0xa4   :  { %v197_v33 = vsel %vm196_vm10, 1, %v919_v2  ;;  %v198_v38 = vadd.s32 %v192_v16, %v188_v60  ;;  %vm303_vm11 = vcmp.lt.s32.totalorder %v1138_v61, 4  ;;  %v182_v39 = vadd.s32 %v181_v9, %v171_v23 }
  0xa5   :  { %v296_v21 = vor.u32 %v295_v54, %v294_v63  ;;  %v299_v25 = vor.u32 %v298_v58, %v297_v3  ;;  %v609_v26 = vor.u32 %v1148_v7, %v1144_v4  ;;  %v199_v41 = vadd.s32 %v197_v33, %v191_v31 }
  0xa6   :  { %v268_v43 = vand.u32 2147483647, %v1067_v53  ;;  %v152_v8 = vsel %vm146_vm3, %v149_v49, %v151_v44  ;;  %v173_v42 = vshrl.u32 %v1112_v29, 16  ;;  %vm200_vm12 = vc.u32 %v198_v38, %v194_v10 }
  0xa7   :  { %v309_v48 = vsel %vm303_vm11, %v296_v21, 920167782  ;;  %v313_v18 = vsel %vm303_vm11, %v299_v25, 1326507024  ;;  %v193_v36 = vshrl.u32 %v189_v52, 16  ;;  %v201_v46 = vsel %vm200_vm12, 1, %v919_v2 }
  0xa8   :  { %v275_v50 = vand.u32 8388607, %v268_v43  ;;  %v195_v54 = vshrl.u32 %v190_v1, 16  ;;  %v203_v56 = vadd.s32 %v201_v46, %v199_v41  ;;  %v285_v57 = vshll.u32 %v926_v22, %v282_v37 }
  0xa9   :  { %v286_v0 = vshrl.u32 %v924_v17, %v1120_v14  ;;  %v1174_v58 = vadd.s32 %v182_v39, %v173_v42  ;;  %v288_v59 = vshll.u32 %v924_v17, %v282_v37  ;;  %v289_v52 = vshrl.u32 %v927_v24, %v1120_v14 }
  0xaa   :  { %v276_v29 = vor.u32 8388608, %v275_v50  ;;  %v204_v60 = vadd.s32 %v203_v56, %v193_v36  ;;  %v291_v3 = vshll.u32 %v927_v24, %v282_v37  ;;  %v292_v1 = vshrl.u32 %v925_v20, %v1120_v14 }
  0xab   :  { %v287_v63 = vor.u32 %v286_v0, %v285_v57  ;;  %v1182_v9 = vadd.s32 %v198_v38, %v194_v10  ;;  %v290_v16 = vor.u32 %v289_v52, %v288_v59  ;;  %vm302_vm13 = vcmp.lt.s32.totalorder %v1138_v61, 3 }
  0xac   :  { %v1185_v49 = vshll.u32 %v276_v29, 8  ;;  %v205_v44 = vadd.s32 %v204_v60, %v195_v54  ;;  %v293_v23 = vor.u32 %v292_v1, %v291_v3  ;;  %vm300_vm14 = vcmp.lt.s32.totalorder %v1138_v61, 1 }
  0xad   :  { %v314_v25 = vsel %vm302_vm13, %v296_v21, %v313_v18  ;;  %vm208_vm15 = vc.u32 %v1174_v58, %v1182_v9  ;;  %v308_v37 = vsel %vm300_vm14, %v287_v63, %v290_v16  ;;  %vm301_vm0 = vcmp.lt.s32.totalorder %v1138_v61, 2 }
  0xae   :  { %v209_v31 = vadd.s32 1, %v205_v44  ;;  %v310_v10 = vsel %vm302_vm13, %v293_v23, %v309_v48  ;;  %v312_v33 = vsel %vm300_vm14, %v290_v16, %v293_v23  ;;  %v206_v38 = vmul.u32 %v1032_v19, %v152_v8 }
  0xaf   :  { %v311_v21 = vsel %vm301_vm0, %v308_v37, %v310_v10  ;;  %v315_v39 = vsel %vm301_vm0, %v312_v33, %v314_v25  ;;  %v317_v41 = vand.u32 65535, %v1185_v49  ;;  %v318_v18 = vshrl.u32 %v1185_v49, 16 }
  0xb0   :  { %v210_v42 = vsel %vm208_vm15, %v209_v31, %v205_v44  ;;  %v319_v36 = vand.u32 65535, %v315_v39  ;;  %v320_v46 = vshrl.u32 %v315_v39, 16  ;;  %v341_v48 = vand.u32 65535, %v311_v21 }
  0xb1   :  { %v211_v50 = vadd.s32 %v210_v42, %v206_v38  ;;  %v342_v54 = vshrl.u32 %v311_v21, 16  ;;  %v1207_v56 = vshrl.u32 %v1093_v62, 5  ;;  %v450_v57 = vshrl.u32 %v922_v6, %v1099_v11 }
  0xb2   :  { %v322_v19 = vmul.u32 %v320_v46, %v317_v41  ;;  %v323_v8 = vmul.u32 %v319_v36, %v318_v18  ;;  %v345_v59 = vmul.u32 %v341_v48, %v318_v18  ;;  %v284_v52 = vshrl.u32 %v926_v22, %v1120_v14 }
  0xb3   :  { %v212_v0 = vadd.s32 536870912, %v211_v50  ;;  %v344_v29 = vmul.u32 %v342_v54, %v317_v41  ;;  %v305_v60 = vsel %vm303_vm11, %v293_v23, 2102212464  ;;  %v321_v3 = vmul.u32 %v319_v36, %v317_v41 }
  0xb4   :  { %v325_v1 = vshll.u32 %v322_v19, 16  ;;  %v324_v62 = vmul.u32 %v320_v46, %v318_v18  ;;  %v343_v25 = vmul.u32 %v341_v48, %v317_v41  ;;  %v327_v31 = vshll.u32 %v323_v8, 16 }
  0xb5   :  { %v1215_v44 = vshrl.u32 %v212_v0, 30  ;;  %v347_v37 = vshll.u32 %v344_v29, 16  ;;  %v346_v33 = vmul.u32 %v342_v54, %v318_v18  ;;  %v349_v39 = vshll.u32 %v345_v59, 16 }
  0xb6   :  { %vm329_vm1 = vc.u32 %v321_v3, %v325_v1  ;;  %v331_v10 = vadd.s32 %v325_v1, %v321_v3  ;;  %v304_v41 = vsel %vm300_vm14, %v284_v52, %v287_v63  ;;  %v306_v18 = vsel %vm302_vm13, %v290_v16, %v305_v60 }
  0xb7   :  { %v214_v38 = vshll.u32 %v1215_v44, 30  ;;  %v330_v21 = vsel %vm329_vm1, 1, %v919_v2  ;;  %vm351_vm2 = vc.u32 %v343_v25, %v347_v37  ;;  %v353_v42 = vadd.s32 %v347_v37, %v343_v25 }
  0xb8   :  { %v332_v14 = vadd.s32 %v330_v21, %v324_v62  ;;  %vm333_vm3 = vc.u32 %v331_v10, %v327_v31  ;;  %v352_v23 = vsel %vm351_vm2, 1, %v919_v2  ;;  %v326_v54 = vshrl.u32 %v322_v19, 16 }
  0xb9   :  { %v215_v36 = vsub.s32 %v211_v50, %v214_v38  ;;  %v334_v46 = vsel %vm333_vm3, 1, %v919_v2  ;;  %v354_v48 = vadd.s32 %v352_v23, %v346_v33  ;;  %vm355_vm4 = vc.u32 %v353_v42, %v349_v39 }
  0xba   :  { %v336_v0 = vadd.s32 %v334_v46, %v332_v14  ;;  %v356_v1 = vsel %vm355_vm4, 1, %v919_v2  ;;  %v1532_v62 = vand.u32 2147483647, %v1023_v12  ;;  %v328_v25 = vshrl.u32 %v323_v8, 16 }
  0xbb   :  { %vm216_vm5 = vcmp.lt.s32.totalorder %v215_v36, 0  ;;  %v217_v3 = vsub.s32 0, %v215_v36  ;;  %v348_v37 = vshrl.u32 %v344_v29, 16  ;;  %v358_v31 = vadd.s32 %v356_v1, %v354_v48 }
  0xbc   :  { %v337_v50 = vadd.s32 %v336_v0, %v326_v54  ;;  %v449_v63 = vshll.u32 %v925_v20, %v1096_v5  ;;  %vm458_vm6 = vcmp.lt.s32.totalorder %v1207_v56, 4  ;;  %v307_v16 = vsel %vm301_vm0, %v304_v41, %v306_v18 }
  0xbd   :  { %v218_v52 = vsel %vm216_vm5, %v217_v3, %v215_v36  ;;  %v350_v10 = vshrl.u32 %v345_v59, 16  ;;  %v359_v33 = vadd.s32 %v358_v31, %v348_v37  ;;  %v468_v8 = vsel %vm458_vm6, %v454_v32, 1326507024 }
  0xbe   :  { %v219_v19 = vclz %v218_v52  ;;  %v1232_v60 = vadd.s32 %v337_v50, %v328_v25  ;;  %v451_v38 = vor.u32 %v450_v57, %v449_v63  ;;  %v1239_v29 = vadd.s32 %v353_v42, %v349_v39 }
  0xbf   :  { %v430_v21 = vand.u32 8388607, %v1532_v62  ;;  %v207_v61 = vadd.s32 %v1182_v9, %v1174_v58  ;;  %v360_v23 = vadd.s32 %v359_v33, %v350_v10  ;;  %v361_v59 = vmul.u32 %v1185_v49, %v307_v16 }
  0xc0   :  { %v840_v14 = vadd.s32 4294967294, %v219_v19  ;;  %vm363_vm7 = vc.u32 %v1232_v60, %v1239_v29  ;;  %v441_v27 = vshrl.u32 %v924_v17, %v1099_v11  ;;  %v443_v28 = vshll.u32 %v924_v17, %v1096_v5 }
  0xc1   :  { %v444_v32 = vshrl.u32 %v927_v24, %v1099_v11  ;;  %v364_v57 = vadd.s32 1, %v360_v23  ;;  %v440_v58 = vshll.u32 %v926_v22, %v1096_v5  ;;  %v447_v9 = vshrl.u32 %v925_v20, %v1099_v11 }
  0xc2   :  { %vm841_vm8 = vcmp.lt.s32.totalorder %v840_v14, 0  ;;  %v431_v39 = vor.u32 8388608, %v430_v21  ;;  %v446_v41 = vshll.u32 %v927_v24, %v1096_v5  ;;  %vm455_vm9 = vcmp.lt.s32.totalorder %v1207_v56, 1 }
  0xc3   :  { %v222_v49 = vsel %vm841_vm8, 0, %v840_v14  ;;  %v1258_v42 = vor.u32 %v444_v32, %v443_v28  ;;  %v365_v18 = vsel %vm363_vm7, %v364_v57, %v360_v23  ;;  %v1263_v0 = vor.u32 %v441_v27, %v440_v58 }
  0xc4   :  { %v223_v46 = vsub.s32 32, %v222_v49  ;;  %v227_v48 = vsub.s32 4294967266, %v222_v49  ;;  %v366_v54 = vadd.s32 %v365_v18, %v361_v59  ;;  %v448_v3 = vor.u32 %v447_v9, %v446_v41 }
  0xc5   :  { %vm457_vm10 = vcmp.lt.s32.totalorder %v1207_v56, 3  ;;  %v224_v1 = vshll.u32 %v215_v36, %v222_v49  ;;  %v464_v5 = vsel %vm458_vm6, %v451_v38, 920167782  ;;  %v605_v31 = vshrl.u32 %v922_v6, %v1133_v30 }
  0xc6   :  { %v225_v25 = vshrl.u32 %v207_v61, %v223_v46  ;;  %v228_v50 = vadd.s32 127, %v227_v48  ;;  %v469_v37 = vsel %vm457_vm10, %v451_v38, %v468_v8  ;;  %v367_v63 = vadd.s32 536870912, %v366_v54 }
  0xc7   :  { %v467_v52 = vsel %vm455_vm9, %v1258_v42, %v448_v3  ;;  %v237_v36 = vsub.s32 4, %v1215_v44  ;;  %vm456_vm11 = vcmp.lt.s32.totalorder %v1207_v56, 2  ;;  %v463_v33 = vsel %vm455_vm9, %v1263_v0, %v1258_v42 }
  0xc8   :  { %v226_v16 = vor.u32 %v225_v25, %v224_v1  ;;  %v229_v19 = vshll.u32 %v228_v50, 23  ;;  %v1277_v10 = vshrl.u32 %v367_v63, 30  ;;  %v470_v6 = vsel %vm456_vm11, %v467_v52, %v469_v37 }
  0xc9   :  { %v1285_v38 = vshll.u32 %v431_v39, 8  ;;  %v465_v21 = vsel %vm457_vm10, %v448_v3, %v464_v5  ;;  %v474_v61 = vand.u32 65535, %v470_v6  ;;  %v475_v14 = vshrl.u32 %v470_v6, 16 }
  0xca   :  { %v230_v8 = vor.u32 4788187, %v229_v19  ;;  %vm1291_vm12 = vcmp.le.f32.partialorder %v113_v45, 0.7853982  ;;  %vm115_vm13 = vcmp.lt.s32.totalorder %v1001_v35, 0  ;;  %v369_v59 = vshll.u32 %v1277_v10, 30 }
  0xcb   :  { %v472_v27 = vand.u32 65535, %v1285_v38  ;;  %v604_v28 = vshll.u32 %v925_v20, %v1123_v15  ;;  %v233_v57 = vcvt.s32.f32 %v226_v16  ;;  %v473_v58 = vshrl.u32 %v1285_v38, 16 }
  0xcc   :  { %v231_v32 = vand.u32 2147483647, %v230_v8  ;;  %v1302_v9 = vshrl.u32 %v1117_v40, 5  ;;  %v1304_v45 = vsub.s32 %v366_v54, %v369_v59  ;;  %v466_v49 = vsel %vm456_vm11, %v463_v33, %v465_v21 }
  0xcd   :  { %v477_v39 = vmul.u32 %v475_v14, %v472_v27  ;;  %v1308_v41 = vor.u32 %v605_v31, %v604_v28  ;;  %v1313_v48 = vsel %vm115_vm13, %v237_v36, %v1215_v44  ;;  %v478_v18 = vmul.u32 %v474_v61, %v473_v58 }
  0xce   :  { %v234_v46 = vmul.f32 %v233_v57, %v231_v32  ;;  %vm371_vm14 = vcmp.lt.s32.totalorder %v1304_v45, 0  ;;  %v372_v40 = vsub.s32 0, %v1304_v45  ;;  %v476_v1 = vmul.u32 %v474_v61, %v472_v27 }
  0xcf   :  { %v480_v54 = vshll.u32 %v477_v39, 16  ;;  %v439_v50 = vshrl.u32 %v926_v22, %v1099_v11  ;;  %v496_v37 = vand.u32 65535, %v466_v49  ;;  %v497_v5 = vshrl.u32 %v466_v49, 16 }
  0xd0   :  { %v235_v25 = vxor.u32 2147483648, %v234_v46  ;;  %v373_v31 = vsel %vm371_vm14, %v372_v40, %v1304_v45  ;;  %v479_v63 = vmul.u32 %v475_v14, %v473_v58  ;;  %v482_v19 = vshll.u32 %v478_v18, 16 }
  0xd1   :  { %vm484_vm15 = vc.u32 %v476_v1, %v480_v54  ;;  %v486_v52 = vadd.s32 %v480_v54, %v476_v1  ;;  %v374_v16 = vclz %v373_v31  ;;  %vm270_vm0 = vcmp.lt.s32.totalorder %v1067_v53, 0 }
  0xd2   :  { %v236_v44 = vsel %vm115_vm13, %v235_v25, %v234_v46  ;;  %v485_v36 = vsel %vm484_vm15, 1, %v919_v2  ;;  %v362_v11 = vadd.s32 %v1239_v29, %v1232_v60  ;;  %v392_v6 = vsub.s32 4, %v1277_v10 }
  0xd3   :  { %v1326_v33 = vsel %vm1291_vm12, %v1001_v35, %v236_v44  ;;  %v460_v8 = vsel %vm458_vm6, %v448_v3, 2102212464  ;;  %v843_v61 = vadd.s32 4294967294, %v374_v16  ;;  %v487_v14 = vadd.s32 %v485_v36, %v479_v63 }
  0xd4   :  { %v241_v21 = vmul.f32 %v1326_v33, %v1326_v33  ;;  %vm488_vm1 = vc.u32 %v486_v52, %v482_v19  ;;  %v481_v59 = vshrl.u32 %v477_v39, 16  ;;  %v499_v32 = vmul.u32 %v497_v5, %v472_v27 }
  0xd5   :  { %v489_v28 = vsel %vm488_vm1, 1, %v919_v2  ;;  %v500_v57 = vmul.u32 %v496_v37, %v473_v58  ;;  %vm844_vm2 = vcmp.lt.s32.totalorder %v843_v61, 0  ;;  %vm1339_vm3 = vcmp.le.f32.partialorder %v268_v43, 0.7853982 }
  0xd6   :  { %v242_v49 = vmul.f32 -0.001358992, %v241_v21  ;;  %v249_v46 = vmul.f32 -0.00019511016, %v241_v21  ;;  %v491_v60 = vadd.s32 %v489_v28, %v487_v14  ;;  %v377_v3 = vsel %vm844_vm2, 0, %v843_v61 }
  0xd7   :  { %v483_v40 = vshrl.u32 %v478_v18, 16  ;;  %v498_v1 = vmul.u32 %v496_v37, %v472_v27  ;;  %v502_v54 = vshll.u32 %v499_v32, 16  ;;  %vm613_vm4 = vcmp.lt.s32.totalorder %v1302_v9, 4 }
  0xd8   :  { %v243_v39 = vadd.f32 0.041655596, %v242_v49  ;;  %v250_v25 = vadd.f32 0.008332121, %v249_v46  ;;  %v378_v31 = vsub.s32 32, %v377_v3  ;;  %v501_v63 = vmul.u32 %v497_v5, %v473_v58 }
  0xd9   :  { %v382_v52 = vsub.s32 4294967266, %v377_v3  ;;  %v492_v44 = vadd.s32 %v491_v60, %v481_v59  ;;  %v504_v16 = vshll.u32 %v500_v57, 16  ;;  %vm506_vm5 = vc.u32 %v498_v1, %v502_v54 }
  0xda   :  { %v244_v19 = vmul.f32 %v243_v39, %v241_v21  ;;  %v251_v36 = vmul.f32 %v250_v25, %v241_v21  ;;  %v380_v43 = vshrl.u32 %v362_v11, %v378_v31  ;;  %v507_v14 = vsel %vm506_vm5, 1, %v919_v2 }
  0xdb   :  { %v379_v61 = vshll.u32 %v1304_v45, %v377_v3  ;;  %v383_v18 = vadd.s32 127, %v382_v52  ;;  %v493_v27 = vadd.s32 %v492_v44, %v483_v40  ;;  %v508_v37 = vadd.s32 %v502_v54, %v498_v1 }
  0xdc   :  { %v245_v28 = vadd.f32 -0.4999988, %v244_v19  ;;  %v252_v62 = vadd.f32 -0.16666654, %v251_v36  ;;  %v393_v58 = vsel %vm270_vm0, %v392_v6, %v1277_v10  ;;  %v509_v5 = vadd.s32 %v507_v14, %v501_v63 }
  0xdd   :  { %v381_v59 = vor.u32 %v380_v43, %v379_v61  ;;  %v384_v49 = vshll.u32 %v383_v18, 23  ;;  %vm510_vm6 = vc.u32 %v508_v37, %v504_v16  ;;  %v512_v46 = vadd.s32 %v508_v37, %v504_v16 }
  0xde   :  { %v240_v11 = vsel %vm1291_vm12, 0, %v1313_v48  ;;  %v253_v60 = vmul.f32 %v252_v62, %v241_v21  ;;  %v459_v45 = vsel %vm455_vm9, %v439_v50, %v1263_v0  ;;  %v578_v3 = vand.u32 2147483647, %v1072_v55 }
  0xdf   :  { %v385_v40 = vor.u32 4788187, %v384_v49  ;;  %v511_v1 = vsel %vm510_vm6, 1, %v919_v2  ;;  %v1357_v10 = vadd.s32 %v512_v46, %v493_v27  ;;  %vm518_vm7 = vc.u32 %v493_v27, %v512_v46 }
  0xe0   :  { %v395_v6 = vsel %vm1339_vm3, 0, %v393_v58  ;;  %v461_v23 = vsel %vm457_vm10, %v1258_v42, %v460_v8  ;;  %v503_v62 = vshrl.u32 %v499_v32, 16  ;;  %v513_v48 = vadd.s32 %v511_v1, %v509_v5 }
  0xe1   :  { %v619_v0 = vsel %vm613_vm4, %v1308_v41, 920167782  ;;  %v246_v50 = vmul.f32 %v245_v28, %v241_v21  ;;  %v386_v54 = vand.u32 2147483647, %v385_v40  ;;  %v388_v39 = vcvt.s32.f32 %v381_v59 }
  0xe2   :  { %v254_v25 = vadd.f32 1.0, %v253_v60  ;;  %v257_v31 = vadd.s32 3, %v240_v11  ;;  %v505_v63 = vshrl.u32 %v500_v57, 16  ;;  %v514_v52 = vadd.s32 %v513_v48, %v503_v62 }
  0xe3   :  { %v389_v44 = vmul.f32 %v388_v39, %v386_v54  ;;  %v412_v16 = vadd.s32 3, %v395_v6  ;;  %v462_v19 = vsel %vm456_vm11, %v459_v45, %v461_v23  ;;  %v585_v42 = vand.u32 8388607, %v578_v3 }
  0xe4   :  { %v515_v8 = vadd.s32 %v514_v52, %v505_v63  ;;  %v596_v32 = vshrl.u32 %v924_v17, %v1133_v30  ;;  %v598_v21 = vshll.u32 %v924_v17, %v1123_v15  ;;  %v599_v36 = vshrl.u32 %v927_v24, %v1133_v30 }
  0xe5   :  { %v247_v57 = vadd.f32 1.0, %v246_v50  ;;  %v390_v43 = vxor.u32 2147483648, %v389_v44  ;;  %v601_v14 = vshll.u32 %v927_v24, %v1123_v15  ;;  %v602_v56 = vshrl.u32 %v925_v20, %v1133_v30 }
  0xe6   :  { %v255_v61 = vmul.f32 %v254_v25, %v1326_v33  ;;  %v519_v18 = vadd.s32 1, %v515_v8  ;;  %v595_v37 = vshll.u32 %v926_v22, %v1123_v15  ;;  %v1384_v28 = vor.u32 %v599_v36, %v598_v21 }
  0xe7   :  { %v623_v17 = vsel %vm613_vm4, %v609_v26, 1326507024  ;;  %v391_v24 = vsel %vm270_vm0, %v390_v43, %v389_v44  ;;  %v516_v58 = vmul.u32 %v1285_v38, %v462_v19  ;;  %v1394_v20 = vor.u32 %v602_v56, %v601_v14 }
  0xe8   :  { %v1399_v33 = vsel %vm1339_vm3, %v1067_v53, %v391_v24  ;;  %v520_v15 = vsel %vm518_vm7, %v519_v18, %v515_v8  ;;  %v586_v5 = vor.u32 8388608, %v585_v42  ;;  %v1402_v59 = vor.u32 %v596_v32, %v595_v37 }
  0xe9   :  { %v258_v4 = vand.u32 3, %v257_v31  ;;  %v396_v7 = vmul.f32 %v1399_v33, %v1399_v33  ;;  %v521_v26 = vadd.s32 %v520_v15, %v516_v58  ;;  %vm610_vm8 = vcmp.lt.s32.totalorder %v1302_v9, 1 }
  0xea   :  { %v261_v38 = vxor.u32 2147483648, %v255_v61  ;;  %v264_v49 = vxor.u32 2147483648, %v247_v57  ;;  %v1407_v11 = vand.u32 3, %v412_v16  ;;  %v622_v29 = vsel %vm610_vm8, %v1384_v28, %v1394_v20 }
  0xeb   :  { %v397_v27 = vmul.f32 -0.001358992, %v396_v7  ;;  %v404_v46 = vmul.f32 -0.00019511016, %v396_v7  ;;  %v522_v60 = vadd.s32 536870912, %v521_v26  ;;  %vm612_vm9 = vcmp.lt.s32.totalorder %v1302_v9, 3 }
  0xec   :  { %vm611_vm10 = vcmp.lt.s32.totalorder %v1302_v9, 2  ;;  %v618_v45 = vsel %vm610_vm8, %v1402_v59, %v1384_v28  ;;  %v624_v40 = vsel %vm612_vm9, %v1308_v41, %v623_v17  ;;  %v1422_v1 = vshll.u32 %v586_v5, 8 }
  0xed   :  { %vm259_vm11 = vcmp.lt.s32.totalorder %v258_v4, 2  ;;  %v398_v6 = vadd.f32 0.041655596, %v397_v27  ;;  %v405_v23 = vadd.f32 0.008332121, %v404_v46  ;;  %v1424_v62 = vshrl.u32 %v522_v60, 30 }
  0xee   :  { %v625_v48 = vsel %vm611_vm10, %v622_v29, %v624_v40  ;;  %v1429_v50 = vand.u32 65535, %v1422_v1  ;;  %v1432_v54 = vshrl.u32 %v1422_v1, 16  ;;  %v620_v52 = vsel %vm612_vm9, %v1394_v20, %v619_v0 }
  0xef   :  { %v629_v39 = vand.u32 65535, %v625_v48  ;;  %v630_v25 = vshrl.u32 %v625_v48, 16  ;;  %v399_v31 = vmul.f32 %v398_v6, %v396_v7  ;;  %v406_v41 = vmul.f32 %v405_v23, %v396_v7 }
  0xf0   :  { %v524_v63 = vshll.u32 %v1424_v62, 30  ;;  %vm260_vm12 = vcmp.eq.s32.totalorder %v258_v4, 0  ;;  %vm263_vm13 = vcmp.eq.s32.totalorder %v258_v4, 2  ;;  %vm256_vm14 = vweird.f32 %v1001_v35 }
  0xf1   :  { %v632_v44 = vmul.u32 %v630_v25, %v1429_v50  ;;  %v633_v16 = vmul.u32 %v629_v39, %v1432_v54  ;;  %v265_v19 = vsel %vm263_vm13, %v264_v49, %v255_v61  ;;  %v400_v42 = vadd.f32 -0.4999988, %v399_v31 }
  0xf2   :  { %v407_v8 = vadd.f32 -0.16666654, %v406_v41  ;;  %v525_v32 = vsub.s32 %v521_v26, %v524_v63  ;;  %v262_v21 = vsel %vm260_vm12, %v247_v57, %v261_v38  ;;  %v621_v36 = vsel %vm611_vm10, %v618_v45, %v620_v52 }
  0xf3   :  { %v631_v43 = vmul.u32 %v629_v39, %v1429_v50  ;;  %v635_v14 = vshll.u32 %v632_v44, 16  ;;  %v401_v0 = vmul.f32 %v400_v42, %v396_v7  ;;  %vm414_vm15 = vcmp.lt.s32.totalorder %v1407_v11, 2 }
  0xf4   :  { %v408_v56 = vmul.f32 %v407_v8, %v396_v7  ;;  %vm526_vm0 = vcmp.lt.s32.totalorder %v525_v32, 0  ;;  %v527_v18 = vsub.s32 0, %v525_v32  ;;  %vm411_vm1 = vweird.f32 %v1067_v53 }
  0xf5   :  { %v634_v61 = vmul.u32 %v630_v25, %v1432_v54  ;;  %v637_v37 = vshll.u32 %v633_v16, 16  ;;  %vm639_vm2 = vc.u32 %v631_v43, %v635_v14  ;;  %v641_v17 = vadd.s32 %v635_v14, %v631_v43 }
  0xf6   :  { %v402_v57 = vadd.f32 1.0, %v401_v0  ;;  %v409_v24 = vadd.f32 1.0, %v408_v56  ;;  %v528_v58 = vsel %vm526_vm0, %v527_v18, %v525_v32  ;;  %v640_v15 = vsel %vm639_vm2, 1, %v919_v2 }
  0xf7   :  { %v266_v5 = vsel %vm259_vm11, %v262_v21, %v265_v19  ;;  %v529_v26 = vclz %v528_v58  ;;  %v642_v7 = vadd.s32 %v640_v15, %v634_v61  ;;  %vm643_vm3 = vc.u32 %v641_v17, %v637_v37 }
  0xf8   :  { %v410_v38 = vmul.f32 %v409_v24, %v1399_v33  ;;  %v419_v49 = vxor.u32 2147483648, %v402_v57  ;;  %v644_v29 = vsel %vm643_vm3, 1, %v919_v2  ;;  %v651_v27 = vand.u32 65535, %v621_v36 }
  0xf9   :  { %vm415_vm5 = vcmp.eq.s32.totalorder %v1407_v11, 0  ;;  %vm418_vm6 = vcmp.eq.s32.totalorder %v1407_v11, 2  ;;  %vm791_vm7 = vcmask 392192   ;;  %v846_v46 = vadd.s32 4294967294, %v529_v26 }
  0xfa   :  { %v416_v60 = vxor.u32 2147483648, %v410_v38  ;;  %v636_v45 = vshrl.u32 %v632_v44, 16  ;;  %v646_v40 = vadd.s32 %v644_v29, %v642_v7  ;;  %v652_v4 = vshrl.u32 %v621_v36, 16 }
  0xfb   :  { %v267_v6 = vsel %vm256_vm14, nan, %v266_v5  ;;  %v420_v23 = vsel %vm418_vm6, %v419_v49, %v410_v38  ;;  %vm847_vm11 = vcmp.lt.s32.totalorder %v846_v46, 0  ;;  %v655_v33 = vmul.u32 %v651_v27, %v1432_v54 }
  0xfc   :  { %v417_v48 = vsel %vm415_vm5, %v402_v57, %v416_v60  ;;  %v532_v39 = vsel %vm847_vm11, 0, %v846_v46  ;;  %v647_v25 = vadd.s32 %v646_v40, %v636_v45  ;;  %v654_v31 = vmul.u32 %v652_v4, %v1429_v50 }
  0xfd   :  { %v421_v41 = vsel %vm414_vm15, %v417_v48, %v420_v23  ;;  %v533_v63 = vsub.s32 32, %v532_v39  ;;  %v537_v52 = vsub.s32 4294967266, %v532_v39  ;;  %v638_v44 = vshrl.u32 %v633_v16, 16  ;;  %v1467_v16 = vld [vmem:[%s1530_s5] ss:$0 sm:$0xff]  ;;  %s928_s5 = smov [#allocation2]  }
  0xfe   :  { %v422_v19 = vsel %vm411_vm1, nan, %v421_v41  ;;  %v534_v35 = vshll.u32 %v525_v32, %v532_v39  ;;  %v653_v42 = vmul.u32 %v651_v27, %v1429_v50  ;;  %v657_v8 = vshll.u32 %v654_v31, 16  ;;  %s825_s14 = sshll.u32 %s928_s5, 4  ;;  %s826_s14 = int_to_ptr.vmem [resolvable:$true] %s825_s14 }
  0xff   :  { %v733_v21 = vpack.c.bf16 %v422_v19, %v267_v6  ;;  %v535_v36 = vshrl.u32 %v1357_v10, %v533_v63  ;;  %v538_v43 = vadd.s32 127, %v537_v52  ;;  %v648_v14 = vadd.s32 %v647_v25, %v638_v44 }
 0x100   :  { %v656_v0 = vmul.u32 %v652_v4, %v1432_v54  ;;  %v659_v56 = vshll.u32 %v655_v33, 16  ;;  %vm661_vm12 = vc.u32 %v653_v42, %v657_v8  ;;  %v663_v11 = vadd.s32 %v657_v8, %v653_v42 }
 0x101   :  { %863 = vmatmul.msk.bf16.vlgmr.msra.gmra.mxu0 %vm791_vm7, %v733_v21  ;;  %v536_v53 = vor.u32 %v535_v36, %v534_v35  ;;  %v539_v50 = vshll.u32 %v538_v43, 23  ;;  %v615_v10 = vsel %vm613_vm4, %v1394_v20, 2102212464  ;;  %v662_v32 = vsel %vm661_vm12, 1, %v919_v2 }
 0x102   :  { %v664_v18 = vadd.s32 %v662_v32, %v656_v0  ;;  %vm665_vm13 = vc.u32 %v663_v11, %v659_v56  ;;  %v667_v54 = vadd.s32 %v663_v11, %v659_v56  ;;  %v1476_v61 = vadd.f32 %v1467_v16, %v1025_v13 }
 0x103   :  { %v540_v37 = vor.u32 4788187, %v539_v50  ;;  %v594_v17 = vshrl.u32 %v926_v22, %v1133_v30  ;;  %v658_v57 = vshrl.u32 %v654_v31, 16  ;;  %v666_v24 = vsel %vm665_vm13, 1, %v919_v2 }
 0x104   :  { %v668_v58 = vadd.s32 %v666_v24, %v664_v18  ;;  %v672_v15 = vadd.s32 %v667_v54, %v648_v14  ;;  %vm673_vm14 = vc.u32 %v648_v14, %v667_v54  ;;  %v1483_v20 = vadd.f32 %v1467_v16, %v1062_v51 }
 0x105   :  { %v541_v5 = vand.u32 2147483647, %v540_v37  ;;  %v543_v26 = vcvt.s32.f32 %v536_v53  ;;  %v614_v13 = vsel %vm610_vm8, %v594_v17, %v1402_v59  ;;  %v616_v22 = vsel %vm612_vm9, %v1384_v28, %v615_v10 }
 0x106   :  { %v660_v30 = vshrl.u32 %v655_v33, 16  ;;  %v669_v7 = vadd.s32 %v668_v58, %v658_v57  ;;  %v617_v38 = vsel %vm611_vm10, %v614_v13, %v616_v22  ;;  %vm425_vm4 = vcmp.lt.s32.totalorder %v1023_v12, 0 }
 0x107   :  { %v544_v2 = vmul.f32 %v543_v26, %v541_v5  ;;  %v547_v51 = vsub.s32 4, %v1424_v62  ;;  %v1537_v46 = vand.u32 2147483647, %v1023_v12  ;;  %v671_v60 = vmul.u32 %v1422_v1, %v617_v38 }
 0x108   :  { %v670_v49 = vadd.s32 %v669_v7, %v660_v30  ;;  %vm580_vm2 = vcmp.lt.s32.totalorder %v1072_v55, 0  ;;  %vm579_vm3 = vcmp.le.f32.partialorder %v578_v3, 0.7853982  ;;  %vm566_vm12 = vweird.f32 %v1023_v12 }
 0x109   :  { %v545_v29 = vxor.u32 2147483648, %v544_v2  ;;  %vm1497_vm8 = vcmp.le.f32.partialorder %v1537_v46, 0.7853982  ;;  %v548_v6 = vsel %vm425_vm4, %v547_v51, %v1424_v62  ;;  %vm721_vm13 = vweird.f32 %v1072_v55 }
 0x10a   :  { %v674_v27 = vadd.s32 1, %v670_v49  ;;  %v550_v39 = vsel %vm1497_vm8, 0, %v548_v6 }
 0x10b   :  { %v546_v28 = vsel %vm425_vm4, %v545_v29, %v544_v2  ;;  %v567_v44 = vadd.s32 3, %v550_v39 }
 0x10c   :  { %v549_v9 = vsel %vm1497_vm8, %v1023_v12, %v546_v28  ;;  %v675_v45 = vsel %vm673_vm14, %v674_v27, %v670_v49 }
 0x10d   :  { %v551_v40 = vmul.f32 %v549_v9, %v549_v9  ;;  %v676_v4 = vadd.s32 %v675_v45, %v671_v60  ;;  %v568_v36 = vand.u32 3, %v567_v44 }
 0x10f   :  { %v552_v23 = vmul.f32 -0.001358992, %v551_v40  ;;  %v559_v33 = vmul.f32 -0.00019511016, %v551_v40  ;;  %v677_v48 = vadd.s32 536870912, %v676_v4  ;;  %vm573_vm10 = vcmp.eq.s32.totalorder %v568_v36, 2 }
 0x110   :  { %vm570_vm15 = vcmp.eq.s32.totalorder %v568_v36, 0  ;;  %vm569_vm1 = vcmp.lt.s32.totalorder %v568_v36, 2  ;;  %v770_v36 = vadd.f32 %v1467_v16, %v1054_v47 }
 0x111   :  { %v553_v25 = vadd.f32 0.041655596, %v552_v23  ;;  %v560_v31 = vadd.f32 0.008332121, %v559_v33  ;;  %v678_v41 = vshrl.u32 %v677_v48, 30 }
 0x113   :  { %v554_v1 = vmul.f32 %v553_v25, %v551_v40  ;;  %v561_v63 = vmul.f32 %v560_v31, %v551_v40  ;;  %v679_v52 = vshll.u32 %v678_v41, 30  ;;  %v702_v49 = vsub.s32 4, %v678_v41 }
 0x115   :  { %v555_v19 = vadd.f32 -0.4999988, %v554_v1  ;;  %v562_v35 = vadd.f32 -0.16666654, %v561_v63  ;;  %v680_v42 = vsub.s32 %v676_v4, %v679_v52  ;;  %v703_v46 = vsel %vm580_vm2, %v702_v49, %v678_v41 }
 0x116   :  { %v705_v28 = vsel %vm579_vm3, 0, %v703_v46 }
 0x117   :  { %v556_v8 = vmul.f32 %v555_v19, %v551_v40  ;;  %v563_v21 = vmul.f32 %v562_v35, %v551_v40  ;;  %vm681_vm9 = vcmp.lt.s32.totalorder %v680_v42, 0  ;;  %v682_v62 = vsub.s32 0, %v680_v42 }
 0x118   :  { %v722_v4 = vadd.s32 3, %v705_v28 }
 0x119   :  { %v557_v43 = vadd.f32 1.0, %v556_v8  ;;  %v564_v14 = vadd.f32 1.0, %v563_v21  ;;  %v683_v0 = vsel %vm681_vm9, %v682_v62, %v680_v42  ;;  %v769_v8 = vadd.f32 %v1467_v16, %v998_v34 }
 0x11a   :  { %v684_v56 = vclz %v683_v0  ;;  %v723_v39 = vand.u32 3, %v722_v4 }
 0x11b   :  { %v565_v11 = vmul.f32 %v564_v14, %v549_v9  ;;  %v574_v53 = vxor.u32 2147483648, %v557_v43 }
 0x11c   :  { %v849_v50 = vadd.s32 4294967294, %v684_v56  ;;  %vm728_vm5 = vcmp.eq.s32.totalorder %v723_v39, 2  ;;  %vm725_vm6 = vcmp.eq.s32.totalorder %v723_v39, 0  ;;  %vm724_vm11 = vcmp.lt.s32.totalorder %v723_v39, 2 }
 0x11d   :  { %v571_v10 = vxor.u32 2147483648, %v565_v11  ;;  %v575_v32 = vsel %vm573_vm10, %v574_v53, %v565_v11 }
 0x11e   :  { %vm850_vm0 = vcmp.lt.s32.totalorder %v849_v50, 0 }
 0x11f   :  { %v572_v18 = vsel %vm570_vm15, %v557_v43, %v571_v10  ;;  %v687_v54 = vsel %vm850_vm0, 0, %v849_v50 }
 0x120   :  { %v576_v37 = vsel %vm569_vm1, %v572_v18, %v575_v32  ;;  %v688_v17 = vsub.s32 32, %v687_v54  ;;  %v692_v57 = vsub.s32 4294967266, %v687_v54  ;;  %v689_v24 = vshll.u32 %v680_v42, %v687_v54 }
 0x121   :  { %v577_v19 = vsel %vm566_vm12, nan, %v576_v37 }
 0x122   :  { %v690_v58 = vshrl.u32 %v672_v15, %v688_v17  ;;  %v693_v5 = vadd.s32 127, %v692_v57 }
 0x124   :  { %v691_v26 = vor.u32 %v690_v58, %v689_v24  ;;  %v694_v13 = vshll.u32 %v693_v5, 23 }
 0x126   :  { %v695_v22 = vor.u32 4788187, %v694_v13  ;;  %v698_v7 = vcvt.s32.f32 %v691_v26 }
 0x128   :  { %v696_v30 = vand.u32 2147483647, %v695_v22 }
 0x12a   :  { %v699_v2 = vmul.f32 %v698_v7, %v696_v30 }
 0x12c   :  { %v700_v38 = vxor.u32 2147483648, %v699_v2 }
 0x12e   :  { %v701_v29 = vsel %vm580_vm2, %v700_v38, %v699_v2 }
 0x12f   :  { %v704_v51 = vsel %vm579_vm3, %v1072_v55, %v701_v29 }
 0x130   :  { %v706_v27 = vmul.f32 %v704_v51, %v704_v51 }
 0x132   :  { %v707_v15 = vmul.f32 -0.001358992, %v706_v27  ;;  %v714_v59 = vmul.f32 -0.00019511016, %v706_v27 }
 0x134   :  { %v708_v60 = vadd.f32 0.041655596, %v707_v15  ;;  %v715_v9 = vadd.f32 0.008332121, %v714_v59 }
 0x136   :  { %v709_v45 = vmul.f32 %v708_v60, %v706_v27  ;;  %v716_v40 = vmul.f32 %v715_v9, %v706_v27 }
 0x138   :  { %v710_v6 = vadd.f32 -0.4999988, %v709_v45  ;;  %v717_v23 = vadd.f32 -0.16666654, %v716_v40 }
 0x13a   :  { %v711_v33 = vmul.f32 %v710_v6, %v706_v27  ;;  %v718_v48 = vmul.f32 %v717_v23, %v706_v27 }
 0x13c   :  { %v712_v25 = vadd.f32 1.0, %v711_v33  ;;  %v719_v3 = vadd.f32 1.0, %v718_v48 }
 0x13e   :  { %v720_v31 = vmul.f32 %v719_v3, %v704_v51  ;;  %v729_v1 = vxor.u32 2147483648, %v712_v25 }
 0x140   :  { %v726_v63 = vxor.u32 2147483648, %v720_v31  ;;  %v730_v41 = vsel %vm728_vm5, %v729_v1, %v720_v31 }
 0x142   :  { %v727_v52 = vsel %vm725_vm6, %v712_v25, %v726_v63 }
 0x143   :  { %v731_v44 = vsel %vm724_vm11, %v727_v52, %v730_v41 }
 0x144   :  { %v732_v35 = vsel %vm721_vm13, nan, %v731_v44 }
 0x145   :  { %v734_v42 = vpack.c.bf16 %v732_v35, %v577_v19 }
 0x147   :  { %864 = vmatmul.msk.bf16.vlgmr.msra.gmra.mxu1 %vm791_vm7, %v734_v42 }
 0x17e   :  { %v807_v21 = vpop.f32.mrf.mxu0 }
 0x17f   :  { %v808_v62 = vadd.f32 %v807_v21, %v769_v8 }
 0x181   :  { %817 = vst [vmem:[#allocation2] sm:$0xff] %v808_v62 }
 0x186   :  { %v809_v43 = vpop.f32.mrf.mxu0 }
 0x187   :  { %v810_v14 = vadd.f32 %v809_v43, %v770_v36 }
 0x189   :  { %818 = vst [vmem:[#allocation2 + $0x8] sm:$0xff] %v810_v14 }
 0x1c4   :  { %v812_v12 = vpop.f32.mrf.mxu1 }
 0x1c5   :  { %v813_v55 = vadd.f32 %v812_v12, %v1476_v61 }
 0x1c7   :  { %819 = vst [vmem:[#allocation2 + $0x10] sm:$0xff] %v813_v55 }
 0x1cc   :  { %v814_v34 = vpop.f32.mrf.mxu1 }
 0x1cd   :  { %v815_v0 = vadd.f32 %v814_v34, %v1483_v20 }
 0x1cf   :  { %820 = vst [vmem:[#allocation2 + $0x18] sm:$0xff] %v815_v0 }
 0x1d0   :  { %833 = dma.vmem_to_hbm [thread:$0]  %s826_s14, 512, %s828_s17, [#allocation3], %s929_s18, %s929_s18, %s930_s19  }
 0x1d1   :  { %917 = dma.done.wait [#allocation3], 512  }
 0x1d2   :  { %918 = vsyncadd [#allocation3], 4294966784 }
 0x1d3   :  { %838 = vsyncpa [#allocation3], 1 }

</bundles_post_ra>
